<compile_context>
chip_gen: v5e
topology: v5e:2x2
jax: 0.10.0
libtpu: 0.0.40
codegen_flags: <defaults>
</compile_context>

<pallas_src>
import jax
import jax.numpy as jnp
from jax import lax
from jax.experimental import pallas as pl
from jax.experimental.pallas import tpu as pltpu


NEG_BIG = -1.0e30          # plain Python float: avoids captured-constant tracing error
LANE = 128
SUBLANE = 8
MIB = 1 << 20
PIPE_BUDGET = 16 * MIB     # double-buffered pipelined inputs for kernel 2


# ---------------------------------------------------------------------------
# Helpers
# ---------------------------------------------------------------------------

def _round_up(x, m):
    return ((x + m - 1) // m) * m


def _pick_divisor_chunk(n, cap, align=8):
    """Largest chunk <= cap dividing n, multiple of `align` (n assumed % align == 0)."""
    if n <= cap:
        return n
    for d in range(cap, 0, -1):
        if n % d == 0 and d % align == 0:
            return d
    return n


# ---------------------------------------------------------------------------
# Kernel 1: fused fe_extractor + hoisted LSTM input projection
# ---------------------------------------------------------------------------

def _extract_project_kernel(x_ref, wext_ref, bext_ref, wih_ref, bg_ref, o_ref):
    # x: (rt, Din) f32 ; wext: (Din, H) bf16 ; bext: (1, H) f32
    # wih: (H, 4H) bf16 ; bg: (1, 4H) f32 ; o: (rt, 4H) bf16
    x = x_ref[...].astype(wext_ref.dtype)
    feat = jnp.dot(x, wext_ref[...], preferred_element_type=jnp.float32) + bext_ref[...]
    feat = jnp.maximum(feat, 0.0)                                     # ReLU (f32)
    pg = (jnp.dot(feat.astype(wih_ref.dtype), wih_ref[...],
                  preferred_element_type=jnp.float32) + bg_ref[...])
    o_ref[...] = pg.astype(o_ref.dtype)                               # bf16 store


def extract_project(x_flat, w_ext, b_ext, w_ih, b_gates):
    rows, din = x_flat.shape
    h = w_ext.shape[1]
    four_h = w_ih.shape[1]

    # row tile from a VMEM budget (double-buffered f32 tokens in + bf16 pregates out)
    budget = 12 * MIB
    per_row = 2 * (din * 4 + four_h * 2)
    rt_cap = max(SUBLANE, (budget // per_row) // SUBLANE * SUBLANE)
    rt = _pick_divisor_chunk(rows, min(512, rt_cap), align=SUBLANE)

    est = (2 * rt * (din * 4 + four_h * 2)
           + 2 * (din * h + h * four_h) * 2
           + 2 * (h + four_h) * 4)
    vmem_limit = int(min(64 * MIB, max(32 * MIB, int(est * 1.25) + 2 * MIB)))

    return pl.pallas_call(
        _extract_project_kernel,
        out_shape=jax.ShapeDtypeStruct((rows, four_h), jnp.bfloat16),
        grid=(rows // rt,),
        in_specs=[
            pl.BlockSpec((rt, din), lambda r: (r, 0)),
            pl.BlockSpec((din, h), lambda r: (0, 0)),
            pl.BlockSpec((1, h), lambda r: (0, 0)),
            pl.BlockSpec((h, four_h), lambda r: (0, 0)),
            pl.BlockSpec((1, four_h), lambda r: (0, 0)),
        ],
        out_specs=pl.BlockSpec((rt, four_h), lambda r: (r, 0)),
        compiler_params=pltpu.CompilerParams(
            dimension_semantics=("parallel",),
            vmem_limit_bytes=vmem_limit),
    )(x_flat, w_ext, b_ext, w_ih, b_gates)


# ---------------------------------------------------------------------------
# Kernel 2: LSTM recurrence + online-softmax attention + mlp epilogue
# ---------------------------------------------------------------------------

def _lstm_attn_mlp_kernel(pg_ref, mask_ref, whh_ref, watt_ref, batt_ref, vatt_ref,
                          wmlp_ref, bmlp_ref, o_ref,
                          h_sc, c_sc, m_sc, l_sc, acc_sc):
    # pg_ref  : (tchunk, bchunk, 4H) bf16   hoisted input-projection pregates
    # mask_ref: (tchunk, bchunk, 1)  f32    1 = valid token
    # whh (H,4H) bf16 ; watt (H,A) bf16 ; batt/vatt (1,A) f32
    # wmlp (H,Cp) bf16 ; bmlp (1,Cp) f32 ; o_ref (bchunk, Cp) f32
    t_idx = pl.program_id(1)
    nt = pl.num_programs(1)

    @pl.when(t_idx == 0)
    def _():
        h_sc[...] = jnp.zeros_like(h_sc)
        c_sc[...] = jnp.zeros_like(c_sc)
        m_sc[...] = jnp.full(m_sc.shape, NEG_BIG, jnp.float32)
        l_sc[...] = jnp.zeros_like(l_sc)
        acc_sc[...] = jnp.zeros_like(acc_sc)

    tchunk = pg_ref.shape[0]
    bchunk, H = h_sc.shape
    A = watt_ref.shape[1]

    # hoisted broadcasts (JAX does not CSE broadcast_in_dim; do it once per chunk)
    batt_b = jnp.broadcast_to(batt_ref[...], (bchunk, A))
    vatt_b = jnp.broadcast_to(vatt_ref[...], (bchunk, A))

    def step(t, carry):
        h, c, m, l, acc = carry
        # recurrence: only h @ W_hh stays on the serial chain (input proj. hoisted)
        gates = (pg_ref[t].astype(jnp.float32)
                 + jnp.dot(h.astype(whh_ref.dtype), whh_ref[...],
                           preferred_element_type=jnp.float32))       # (b, 4H)
        i_g = jax.nn.sigmoid(gates[:, 0 * H:1 * H])
        f_g = jax.nn.sigmoid(gates[:, 1 * H:2 * H])
        g_g = jnp.tanh(gates[:, 2 * H:3 * H])
        o_g = jax.nn.sigmoid(gates[:, 3 * H:4 * H])
        c_new = f_g * c + i_g * g_g
        h_new = o_g * jnp.tanh(c_new)

        # online-softmax additive attention (off the serial chain: depends on h_t only)
        e = jnp.tanh(jnp.dot(h_new.astype(watt_ref.dtype), watt_ref[...],
                             preferred_element_type=jnp.float32) + batt_b)   # (b, A)
        s = jnp.sum(e * vatt_b, axis=-1, keepdims=True)                       # (b, 1)
        msk = mask_ref[t]                                                     # (b, 1)
        s = jnp.where(msk > 0.5, s, NEG_BIG)
        m_new = jnp.maximum(m, s)
        scale = jnp.exp(m - m_new)
        p = jnp.exp(s - m_new) * msk
        l_new = scale * l + p
        acc_new = scale * acc + p * h_new
        return h_new, c_new, m_new, l_new, acc_new

    carry0 = (h_sc[...], c_sc[...], m_sc[...], l_sc[...], acc_sc[...])
    h, c, m, l, acc = lax.fori_loop(0, tchunk, step, carry0, unroll=2)
    h_sc[...] = h
    c_sc[...] = c
    m_sc[...] = m
    l_sc[...] = l
    acc_sc[...] = acc

    @pl.when(t_idx == nt - 1)
    def _():
        # guard fully-masked rows (l == 0) -> pooled = 0 -> logits = b_mlp
        denom = jnp.where(l_sc[...] > 0.0, l_sc[...], 1.0)
        pooled = acc_sc[...] * pl.reciprocal(denom, approx=True)              # (b, H)
        o_ref[...] = (jnp.dot(pooled.astype(wmlp_ref.dtype), wmlp_ref[...],
                              preferred_element_type=jnp.float32) + bmlp_ref[...])


def lstm_attention_mlp(pregates_tm, mask_tm, w_hh, w_att, b_att, v_att,
                       w_mlp_p, b_mlp_p, bchunk, tchunk):
    T, B, four_h = pregates_tm.shape
    H = w_hh.shape[0]
    A = w_att.shape[1]
    Cp = w_mlp_p.shape[1]
    grid = (B // bchunk, T // tchunk)

    est = (2 * bchunk * tchunk * (four_h * 2 + LANE * 4)   # bf16 pg + lane-padded mask
           + 2 * (H * four_h + H * A + H * Cp) * 2          # bf16 weights (x2 buffers)
           + 2 * (four_h + 2 * A + Cp) * 4                  # biases
           + (3 * bchunk * H + 2 * bchunk) * 4              # scratch
           + 2 * bchunk * Cp * 4)                           # output block
    vmem_limit = int(min(64 * MIB, max(32 * MIB, int(est * 1.25) + 2 * MIB)))

    return pl.pallas_call(
        _lstm_attn_mlp_kernel,
        out_shape=jax.ShapeDtypeStruct((B, Cp), jnp.float32),
        grid=grid,
        in_specs=[
            pl.BlockSpec((tchunk, bchunk, four_h), lambda b, t: (t, b, 0)),
            pl.BlockSpec((tchunk, bchunk, 1), lambda b, t: (t, b, 0)),
            pl.BlockSpec((H, four_h), lambda b, t: (0, 0)),
            pl.BlockSpec((H, A), lambda b, t: (0, 0)),
            pl.BlockSpec((1, A), lambda b, t: (0, 0)),
            pl.BlockSpec((1, A), lambda b, t: (0, 0)),
            pl.BlockSpec((H, Cp), lambda b, t: (0, 0)),
            pl.BlockSpec((1, Cp), lambda b, t: (0, 0)),
        ],
        out_specs=pl.BlockSpec((bchunk, Cp), lambda b, t: (b, 0)),
        scratch_shapes=[
            pltpu.VMEM((bchunk, H), jnp.float32),   # h
            pltpu.VMEM((bchunk, H), jnp.float32),   # c
            pltpu.VMEM((bchunk, 1), jnp.float32),   # running max m
            pltpu.VMEM((bchunk, 1), jnp.float32),   # running denom l
            pltpu.VMEM((bchunk, H), jnp.float32),   # attention accumulator
        ],
        compiler_params=pltpu.CompilerParams(
            dimension_semantics=("parallel", "arbitrary"),
            vmem_limit_bytes=vmem_limit),
    )(pregates_tm, mask_tm, w_hh, w_att, b_att, v_att, w_mlp_p, b_mlp_p)


# ---------------------------------------------------------------------------
# Tile planning, parameter preparation, forward
# ---------------------------------------------------------------------------

def _plan_tiles(B, T, H):
    B_pad = _round_up(B, SUBLANE)
    if B_pad <= 64:
        bchunk = B_pad                       # single batch chunk, full-extent block
    else:
        bchunk = 64                          # bounds per-step vreg live set; >=2 chunks
        B_pad = _round_up(B, bchunk)         # for B >= 128 (feeds both v7x TCs)
    # double-buffered pipelined bytes per time step:
    #   bf16 pregates (bchunk,4H) + lane-padded f32 mask (bchunk,128)
    per_step = 2 * bchunk * (4 * H * 2 + LANE * 4)
    tchunk = (PIPE_BUDGET // per_step) // SUBLANE * SUBLANE
    tchunk = max(SUBLANE, min(128, tchunk))
    tchunk = min(tchunk, _round_up(T, SUBLANE))
    T_pad = _round_up(T, tchunk)
    return B_pad, bchunk, T_pad, tchunk


def prepare_params(raw):
    """Cast matmul weights to bf16 (f32 MXU accumulation kept in kernels) and pad the
    mlp output dim to a multiple of 128 for lane-dense stores."""
    H, C = raw['w_mlp'].shape
    Cp = max(128, _round_up(C, 128))
    w_mlp_p = jnp.zeros((H, Cp), jnp.float32).at[:, :C].set(raw['w_mlp'])
    b_mlp_p = jnp.zeros((1, Cp), jnp.float32).at[:, :C].set(raw['b_mlp'])
    return {
        'w_ext': raw['w_ext'].astype(jnp.bfloat16),
        'b_ext': raw['b_ext'].astype(jnp.float32),
        'w_ih': raw['w_ih'].astype(jnp.bfloat16),
        'b_gates': raw['b_gates'].astype(jnp.float32),   # = b_ih + b_hh of torch LSTM
        'w_hh': raw['w_hh'].astype(jnp.bfloat16),
        'w_att': raw['w_att'].astype(jnp.bfloat16),
        'b_att': raw['b_att'].astype(jnp.float32),
        'v_att': raw['v_att'].astype(jnp.float32),
        'w_mlp': w_mlp_p.astype(jnp.bfloat16),
        'b_mlp': b_mlp_p,
        'n_classes': C,
    }


def attention_lstm_forward(token, mask, params):
    """token: (B, T, Din) f32, mask: (B, T) (1 = valid). Returns logits (B, C)."""
    B, T, Din = token.shape
    H = params['w_hh'].shape[0]
    C = params['n_classes']

    B_pad, bchunk, T_pad, tchunk = _plan_tiles(B, T, H)

    # host padding: padded rows / steps are fully masked so chunks always divide & align
    token_p = jnp.zeros((B_pad, T_pad, Din), token.dtype).at[:B, :T, :].set(token)
    mask_p = jnp.zeros((B_pad, T_pad), jnp.float32).at[:B, :T].set(mask.astype(jnp.float32))

    # glue: go time-major on the NARROW Din-wide tensor (never transpose the 4H tensor)
    token_tm = jnp.transpose(token_p, (1, 0, 2)).reshape(T_pad * B_pad, Din)
    mask_tm = jnp.transpose(mask_p, (1, 0))[:, :, None]                      # (T, B, 1)

    # fe_extractor fused with hoisted LSTM input projection (bf16 intermediate)
    pregates = extract_project(token_tm, params['w_ext'], params['b_ext'],
                               params['w_ih'], params['b_gates'])            # (T*B, 4H)
    pregates = pregates.reshape(T_pad, B_pad, 4 * H)

    # fe_aggregator (LSTM + masked online-softmax attention) + mlp epilogue
    logits_p = lstm_attention_mlp(pregates, mask_tm, params['w_hh'],
                                  params['w_att'], params['b_att'], params['v_att'],
                                  params['w_mlp'], params['b_mlp'],
                                  bchunk, tchunk)                            # (B_pad, Cp)
    # TODO(synk): return_att=True path (materializing per-step attention weights) not implemented.
    return logits_p[:B, :C]


# ---------------------------------------------------------------------------
# Pure-JAX f32 reference (for tolerance check), init, demo
# ---------------------------------------------------------------------------

def reference_forward(token, mask, pf, C):
    B, T, Din = token.shape
    H = pf['w_hh'].shape[0]
    feat = jax.nn.relu(token @ pf['w_ext'] + pf['b_ext'])                    # (B,T,H)
    h = jnp.zeros((B, H), jnp.float32)
    c = jnp.zeros((B, H), jnp.float32)
    hs = []
    for t in range(T):
        gates = feat[:, t, :] @ pf['w_ih'] + h @ pf['w_hh'] + pf['b_gates']
        i = jax.nn.sigmoid(gates[:, :H]);      f = jax.nn.sigmoid(gates[:, H:2 * H])
        g = jnp.tanh(gates[:, 2 * H:3 * H]);   o = jax.nn.sigmoid(gates[:, 3 * H:])
        c = f * c + i * g
        h = o * jnp.tanh(c)
        hs.append(h)
    hs = jnp.stack(hs, axis=1)                                               # (B,T,H)
    e = jnp.tanh(hs @ pf['w_att'] + pf['b_att'])                             # (B,T,A)
    s = jnp.sum(e * pf['v_att'], axis=-1)                                    # (B,T)
    s = jnp.where(mask > 0.5, s, -1e30)
    a = jax.nn.softmax(s, axis=-1)
    pooled = jnp.einsum('bt,bth->bh', a, hs)
    return pooled @ pf['w_mlp'][:, :C] + pf['b_mlp'][:, :C]


def init_params(key, din, h, att_dim, n_classes):
    ks = jax.random.split(key, 8)
    s = 0.1
    return {
        'w_ext':   s * jax.random.normal(ks[0], (din, h), jnp.float32),
        'b_ext':   jnp.zeros((1, h), jnp.float32),
        'w_ih':    s * jax.random.normal(ks[1], (h, 4 * h), jnp.float32),
        'w_hh':    s * jax.random.normal(ks[2], (h, 4 * h), jnp.float32),
        'b_gates': jnp.zeros((1, 4 * h), jnp.float32),
        'w_att':   s * jax.random.normal(ks[3], (h, att_dim), jnp.float32),
        'b_att':   jnp.zeros((1, att_dim), jnp.float32),
        'v_att':   s * jax.random.normal(ks[4], (1, att_dim), jnp.float32),
        'w_mlp':   s * jax.random.normal(ks[5], (h, n_classes), jnp.float32),
        'b_mlp':   jnp.zeros((1, n_classes), jnp.float32),
    }


if __name__ == "__main__":
    # H/ATT chosen as 128 multiples so gate slices and the attention matmul are
    # lane-tile aligned; everything else stays small.
    B, T, DIN, H, ATT, C = 2, 8, 16, 128, 128, 4

    key = jax.random.PRNGKey(0)
    k_tok, k_par = jax.random.split(key)

    token = jax.random.normal(k_tok, (B, T, DIN), jnp.float32)
    # mask: first batch row fully valid, second row has last 3 positions padded
    mask = jnp.ones((B, T), jnp.float32)
    mask = mask.at[1, T - 3:].set(0.0)

    params = prepare_params(init_params(k_par, DIN, H, ATT, C))

    out = attention_lstm_forward(token, mask, params)
    out = jax.block_until_ready(out)

    assert out.shape == (B, C)
    assert bool(jnp.all(jnp.isfinite(out)))

    # compare against a pure-JAX f32 reference built from the same (bf16-quantized) weights
    pf = {k: (v.astype(jnp.float32) if hasattr(v, 'astype') else v) for k, v in params.items()}
    ref = reference_forward(token, mask, pf, C)
    assert bool(jnp.allclose(out, ref, rtol=5e-2, atol=5e-2))

    print("KERNEL_OK")
</pallas_src>

<mosaic_0001>
module attributes {stable_mosaic.version = 11 : i64} {
  func.func @_extract_project_kernel(%arg0: i32, %arg1: memref<64x16xf32, #tpu.memory_space<vmem>>, %arg2: memref<16x128xbf16, #tpu.memory_space<vmem>>, %arg3: memref<1x128xf32, #tpu.memory_space<vmem>>, %arg4: memref<128x512xbf16, #tpu.memory_space<vmem>>, %arg5: memref<1x512xf32, #tpu.memory_space<vmem>>, %arg6: memref<64x512xbf16, #tpu.memory_space<vmem>>) attributes {dimension_semantics = [#tpu.dimension_semantics<parallel>], iteration_bounds = array<i64: 1>, scalar_prefetch = 0 : i64, scratch_operands = 0 : i64, tpu.core_type = #tpu.core_type<tc>, window_params = [{transform_indices = @transform_0, window_bounds = array<i64: 64, 16>}, {pipeline_mode = #tpu.pipeline_mode<synchronous>, transform_indices = @transform_1, window_bounds = array<i64: 16, 128>}, {pipeline_mode = #tpu.pipeline_mode<synchronous>, transform_indices = @transform_2, window_bounds = array<i64: 1, 128>}, {pipeline_mode = #tpu.pipeline_mode<synchronous>, transform_indices = @transform_3, window_bounds = array<i64: 128, 512>}, {pipeline_mode = #tpu.pipeline_mode<synchronous>, transform_indices = @transform_4, window_bounds = array<i64: 1, 512>}, {transform_indices = @transform_5, window_bounds = array<i64: 64, 512>}]} {
    %c0 = arith.constant 0 : index
    %c0_0 = arith.constant 0 : index
    %0 = vector.load %arg1[%c0, %c0_0] : memref<64x16xf32, #tpu.memory_space<vmem>>, vector<64x16xf32>
    %1 = arith.truncf %0 : vector<64x16xf32> to vector<64x16xbf16>
    %c0_1 = arith.constant 0 : index
    %c0_2 = arith.constant 0 : index
    %2 = vector.load %arg2[%c0_1, %c0_2] : memref<16x128xbf16, #tpu.memory_space<vmem>>, vector<16x128xbf16>
    %cst = arith.constant dense<0.000000e+00> : vector<64x128xf32>
    %3 = tpu.matmul %1, %2, %cst {dimension_numbers = #tpu.dot_dimension_numbers<[1], [0], [0], [1], [0, 0, 1, 1], [], []>} : vector<64x16xbf16>, vector<16x128xbf16>, vector<64x128xf32> -> vector<64x128xf32>
    %c0_3 = arith.constant 0 : index
    %c0_4 = arith.constant 0 : index
    %4 = vector.load %arg3[%c0_3, %c0_4] : memref<1x128xf32, #tpu.memory_space<vmem>>, vector<1x128xf32>
    %5 = vector.broadcast %4 : vector<1x128xf32> to vector<64x128xf32>
    %6 = arith.addf %3, %5 : vector<64x128xf32>
    %cst_5 = arith.constant 0.000000e+00 : f32
    %7 = vector.broadcast %cst_5 : f32 to vector<64x128xf32>
    %8 = arith.maximumf %6, %7 : vector<64x128xf32>
    %9 = arith.truncf %8 : vector<64x128xf32> to vector<64x128xbf16>
    %c0_6 = arith.constant 0 : index
    %c0_7 = arith.constant 0 : index
    %10 = vector.load %arg4[%c0_6, %c0_7] : memref<128x512xbf16, #tpu.memory_space<vmem>>, vector<128x512xbf16>
    %cst_8 = arith.constant dense<0.000000e+00> : vector<64x512xf32>
    %11 = tpu.matmul %9, %10, %cst_8 {dimension_numbers = #tpu.dot_dimension_numbers<[1], [0], [0], [1], [0, 0, 1, 1], [], []>} : vector<64x128xbf16>, vector<128x512xbf16>, vector<64x512xf32> -> vector<64x512xf32>
    %c0_9 = arith.constant 0 : index
    %c0_10 = arith.constant 0 : index
    %12 = vector.load %arg5[%c0_9, %c0_10] : memref<1x512xf32, #tpu.memory_space<vmem>>, vector<1x512xf32>
    %13 = vector.broadcast %12 : vector<1x512xf32> to vector<64x512xf32>
    %14 = arith.addf %11, %13 : vector<64x512xf32>
    %15 = arith.truncf %14 : vector<64x512xf32> to vector<64x512xbf16>
    %c0_11 = arith.constant 0 : index
    %c0_12 = arith.constant 0 : index
    %16 = vector.load %arg6[%c0_11, %c0_12] : memref<64x512xbf16, #tpu.memory_space<vmem>>, vector<64x512xbf16>
    tpu.vector_store %arg6[%c0_11, %c0_12], %15 {strides = array<i32>} : memref<64x512xbf16, #tpu.memory_space<vmem>>, vector<64x512xbf16>,
    return
  }
  func.func @transform_0(%arg0: i32) -> (i32, i32) {
    %c0_i32 = arith.constant 0 : i32
    %c0_i32_0 = arith.constant 0 : i32
    return %arg0, %c0_i32 : i32, i32
  }
  func.func @transform_1(%arg0: i32) -> (i32, i32) {
    %c0_i32 = arith.constant 0 : i32
    %c0_i32_0 = arith.constant 0 : i32
    %c0_i32_1 = arith.constant 0 : i32
    return %c0_i32, %c0_i32_0 : i32, i32
  }
  func.func @transform_2(%arg0: i32) -> (i32, i32) {
    %c0_i32 = arith.constant 0 : i32
    %c0_i32_0 = arith.constant 0 : i32
    %c0_i32_1 = arith.constant 0 : i32
    return %c0_i32, %c0_i32_0 : i32, i32
  }
  func.func @transform_3(%arg0: i32) -> (i32, i32) {
    %c0_i32 = arith.constant 0 : i32
    %c0_i32_0 = arith.constant 0 : i32
    %c0_i32_1 = arith.constant 0 : i32
    return %c0_i32, %c0_i32_0 : i32, i32
  }
  func.func @transform_4(%arg0: i32) -> (i32, i32) {
    %c0_i32 = arith.constant 0 : i32
    %c0_i32_0 = arith.constant 0 : i32
    %c0_i32_1 = arith.constant 0 : i32
    return %c0_i32, %c0_i32_0 : i32, i32
  }
  func.func @transform_5(%arg0: i32) -> (i32, i32) {
    %c0_i32 = arith.constant 0 : i32
    %c0_i32_0 = arith.constant 0 : i32
    return %arg0, %c0_i32 : i32, i32
  }
}

</mosaic_0001>

<bundles_post_ra>
// kernel: tpu_custom_call.1
= control target key start
LH: loop header
LB: loop body
LE: loop exit
PB: predicated region body
PF: predicated region fallthrough
CT: control target
= control target key end

     0   :  { %10 = vsyncpa [#allocation3], 0  ;;  %s835_s0 = inlined_call_operand.vmem [shape: f32[64,16], index: 0, kind: input, shape index: {}]   ;;  %s836_s1 = inlined_call_operand.vmem [shape: bf16[16,128], index: 1, kind: input, shape index: {}]   ;;  %s837_s2 = inlined_call_operand.vmem [shape: f32[1,128], index: 2, kind: input, shape index: {}]   ;;  %s838_s3 = inlined_call_operand.hbm [shape: bf16[128,512], index: 3, kind: input, shape index: {}]   ;;  %s839_s4 = inlined_call_operand.vmem [shape: f32[1,512], index: 4, kind: input, shape index: {}]   ;;  %s840_s5 = inlined_call_operand.hbm [shape: bf16[64,512], index: 5, kind: output, shape index: {}]  }
   0x1   :  { %11 = vsyncpa [#allocation4], 0  ;;  %s22_s20 = sshll.u32 %s838_s3, 4  ;;  %s712_s21 = smov [#allocation2]   ;;  %s23_s20 = int_to_ptr.hbm [resolvable:$true] %s22_s20 }
   0x2   :  { %s24_s22 = sshll.u32 %s712_s21, 4  ;;  %s713_s23 = smov 256   ;;  %s25_s22 = int_to_ptr.vmem [resolvable:$true] %s24_s22 }
   0x3   :  { %s714_s24 = smov 16  }
   0x4   :  { %30 = dma.hbm_to_vmem [thread:$0]  %s23_s20, 4096, %s25_s22, [#allocation3], %s713_s23, %s713_s23, %s714_s24  }
   0x5   :  { %708 = dma.done.wait [#allocation3], 4096  }
   0x6   :  { %709 = vsyncadd [#allocation3], 4294963200  ;;  %v621_v0 = vld [vmem:[%s836_s1] sm:$0xff]  ;;  %v39_v2 = vld [vmem:[%s835_s0 + $0x8] sm:$0xff]  ;;  %vm62_vm0 = vcmask 130048   ;;  %s472_s21 = sshll.u32 %s840_s5, 4  ;;  %s473_s21 = int_to_ptr.hbm [resolvable:$true] %s472_s21 }
   0x7   :  { %v38_v1 = vld [vmem:[%s835_s0] sm:$0xff]  ;;  %82 = vmatpush.bf16.msra.mxu0 %v621_v0  ;;  %654 = vmatpush.bf16.msra.mxu1 %v621_v0  ;;  %v43_v5 = vld [vmem:[%s835_s0 + $0x28] sm:$0xff]  ;;  %v652_v8 = vld [vmem:[#allocation2 + $0xec] sm:$0xf0] }
   0x8   :  { %v46_v3 = vpack.c.bf16 %v39_v2, %v38_v1  ;;  %v42_v4 = vld [vmem:[%s835_s0 + $0x20] sm:$0xff]  ;;  %v609_v11 = vld [vmem:[#allocation2 + $0xf0] sm:$0xf0]  ;;  %v615_v12 = vld [vmem:[#allocation2 + $0xe8] sm:$0xf] }
   0x9   :  { %v48_v6 = vpack.c.bf16 %v43_v5, %v42_v4  ;;  %v607_v7 = vld [vmem:[#allocation2 + $0xe0] sm:$0xf]  ;;  %v650_v9 = vld [vmem:[#allocation2 + $0xe4] sm:$0xf]  ;;  %v653_v13 = vld [vmem:[#allocation2 + $0xf4] sm:$0xf0] }
   0xa   :  { %v608_v10 = vor.u32 %v652_v8, %v607_v7  ;;  %489 = vmatmul.msk.bf16.vlgmr.msra.gmra.mxu0 %vm62_vm0, %v46_v3  ;;  %v612_v14 = vor.u32 %v650_v9, %v609_v11  ;;  %v616_v15 = vor.u32 %v653_v13, %v615_v12  ;;  %v651_v16 = vld [vmem:[#allocation2 + $0xec] sm:$0xf]  ;;  %v617_v17 = vld [vmem:[#allocation2 + $0xf8] sm:$0xf0]  ;;  %v591_v18 = vld [vmem:[#allocation2 + $0xc0] sm:$0xf] }
   0xb   :  { %491 = vmatmul.msk.bf16.vlgmr.msra.gmra.mxu1 %vm62_vm0, %v48_v6  ;;  %v620_v19 = vor.u32 %v651_v16, %v617_v17  ;;  %v648_v20 = vld [vmem:[#allocation2 + $0xcc] sm:$0xf0]  ;;  %v646_v21 = vld [vmem:[#allocation2 + $0xc4] sm:$0xf]  ;;  %v593_v22 = vld [vmem:[#allocation2 + $0xd0] sm:$0xf0] }
   0xc   :  { %318 = vmatpush.bf16.msrb.mxu1 %v608_v10  ;;  %347 = vmatpush.bf16.msra.mxu2 %v612_v14  ;;  %v592_v23 = vor.u32 %v648_v20, %v591_v18  ;;  %v596_v24 = vor.u32 %v646_v21, %v593_v22  ;;  %v599_v25 = vld [vmem:[#allocation2 + $0xc8] sm:$0xf]  ;;  %v649_v26 = vld [vmem:[#allocation2 + $0xd4] sm:$0xf0]  ;;  %v647_v27 = vld [vmem:[#allocation2 + $0xcc] sm:$0xf] }
   0xd   :  { %376 = vmatpush.bf16.msra.mxu3 %v616_v15  ;;  %405 = vmatpush.bf16.msrb.mxu0 %v620_v19  ;;  %v600_v28 = vor.u32 %v649_v26, %v599_v25  ;;  %v601_v29 = vld [vmem:[#allocation2 + $0xd8] sm:$0xf0]  ;;  %v575_v30 = vld [vmem:[#allocation2 + $0xa0] sm:$0xf]  ;;  %v644_v31 = vld [vmem:[#allocation2 + $0xac] sm:$0xf0] }
   0xe   :  { %v604_v32 = vor.u32 %v647_v27, %v601_v29  ;;  %v642_v33 = vld [vmem:[#allocation2 + $0xa4] sm:$0xf]  ;;  %v577_v34 = vld [vmem:[#allocation2 + $0xb0] sm:$0xf0]  ;;  %v583_v35 = vld [vmem:[#allocation2 + $0xa8] sm:$0xf]  ;;  %v576_v36 = vor.u32 %v644_v31, %v575_v30 }
   0xf   :  { %v645_v37 = vld [vmem:[#allocation2 + $0xb4] sm:$0xf0]  ;;  %v643_v38 = vld [vmem:[#allocation2 + $0xac] sm:$0xf]  ;;  %v585_v39 = vld [vmem:[#allocation2 + $0xb8] sm:$0xf0]  ;;  %v580_v40 = vor.u32 %v642_v33, %v577_v34 }
  0x10   :  { %319 = vmatpush.bf16.msrb.mxu1 %v592_v23  ;;  %348 = vmatpush.bf16.msra.mxu2 %v596_v24  ;;  %v584_v41 = vor.u32 %v645_v37, %v583_v35  ;;  %v559_v42 = vld [vmem:[#allocation2 + $0x80] sm:$0xf]  ;;  %v640_v43 = vld [vmem:[#allocation2 + $0x8c] sm:$0xf0]  ;;  %v638_v44 = vld [vmem:[#allocation2 + $0x84] sm:$0xf]  ;;  %v588_v46 = vor.u32 %v643_v38, %v585_v39 }
  0x11   :  { %377 = vmatpush.bf16.msra.mxu3 %v600_v28  ;;  %v40_v45 = vld [vmem:[%s835_s0 + $0x10] sm:$0xff]  ;;  %406 = vmatpush.bf16.msrb.mxu0 %v604_v32  ;;  %v567_v48 = vld [vmem:[#allocation2 + $0x88] sm:$0xf]  ;;  %v641_v49 = vld [vmem:[#allocation2 + $0x94] sm:$0xf0]  ;;  %v560_v55 = vor.u32 %v640_v43, %v559_v42 }
  0x12   :  { %v561_v47 = vld [vmem:[#allocation2 + $0x90] sm:$0xf0]  ;;  %v639_v50 = vld [vmem:[#allocation2 + $0x8c] sm:$0xf]  ;;  %v569_v51 = vld [vmem:[#allocation2 + $0x98] sm:$0xf0]  ;;  %v568_v57 = vor.u32 %v641_v49, %v567_v48 }
  0x13   :  { %v41_v52 = vld [vmem:[%s835_s0 + $0x18] sm:$0xff]  ;;  %v44_v53 = vld [vmem:[%s835_s0 + $0x30] sm:$0xff]  ;;  %v564_v56 = vor.u32 %v638_v44, %v561_v47  ;;  %v572_v58 = vor.u32 %v639_v50, %v569_v51  ;;  %v543_v61 = vld [vmem:[#allocation2 + $0x60] sm:$0xf] }
  0x14   :  { %v45_v54 = vld [vmem:[%s835_s0 + $0x38] sm:$0xff]  ;;  %320 = vmatpush.bf16.msrb.mxu1 %v576_v36  ;;  %349 = vmatpush.bf16.msra.mxu2 %v580_v40  ;;  %v47_v59 = vpack.c.bf16 %v41_v52, %v40_v45  ;;  %v636_v62 = vld [vmem:[#allocation2 + $0x6c] sm:$0xf0]  ;;  %v634_v63 = vld [vmem:[#allocation2 + $0x64] sm:$0xf] }
  0x15   :  { %378 = vmatpush.bf16.msra.mxu3 %v584_v41  ;;  %407 = vmatpush.bf16.msrb.mxu0 %v588_v46  ;;  %v49_v60 = vpack.c.bf16 %v45_v54, %v44_v53  ;;  %v544_v0 = vor.u32 %v636_v62, %v543_v61  ;;  %v545_v1 = vld [vmem:[#allocation2 + $0x70] sm:$0xf0]  ;;  %v551_v2 = vld [vmem:[#allocation2 + $0x68] sm:$0xf]  ;;  %v637_v3 = vld [vmem:[#allocation2 + $0x74] sm:$0xf0] }
  0x16   :  { %v548_v4 = vor.u32 %v634_v63, %v545_v1  ;;  %v552_v5 = vor.u32 %v637_v3, %v551_v2  ;;  %v635_v6 = vld [vmem:[#allocation2 + $0x6c] sm:$0xf]  ;;  %v553_v7 = vld [vmem:[#allocation2 + $0x78] sm:$0xf0]  ;;  %v527_v9 = vld [vmem:[#allocation2 + $0x40] sm:$0xf] }
  0x17   :  { %v556_v8 = vor.u32 %v635_v6, %v553_v7  ;;  %v632_v10 = vld [vmem:[#allocation2 + $0x4c] sm:$0xf0]  ;;  %v630_v11 = vld [vmem:[#allocation2 + $0x44] sm:$0xf]  ;;  %v529_v13 = vld [vmem:[#allocation2 + $0x50] sm:$0xf0] }
  0x18   :  { %321 = vmatpush.bf16.msrb.mxu1 %v560_v55  ;;  %350 = vmatpush.bf16.msra.mxu2 %v564_v56  ;;  %v528_v12 = vor.u32 %v632_v10, %v527_v9  ;;  %v535_v14 = vld [vmem:[#allocation2 + $0x48] sm:$0xf]  ;;  %v633_v15 = vld [vmem:[#allocation2 + $0x54] sm:$0xf0]  ;;  %v532_v16 = vor.u32 %v630_v11, %v529_v13  ;;  %v631_v18 = vld [vmem:[#allocation2 + $0x4c] sm:$0xf] }
  0x19   :  { %379 = vmatpush.bf16.msra.mxu3 %v568_v57  ;;  %408 = vmatpush.bf16.msrb.mxu0 %v572_v58  ;;  %v536_v17 = vor.u32 %v633_v15, %v535_v14  ;;  %v537_v19 = vld [vmem:[#allocation2 + $0x58] sm:$0xf0]  ;;  %v511_v21 = vld [vmem:[#allocation2 + $0x20] sm:$0xf]  ;;  %v628_v22 = vld [vmem:[#allocation2 + $0x2c] sm:$0xf0] }
  0x1a   :  { %490 = vmatmul.msk.bf16.gmra.mxu0 %vm62_vm0, %v47_v59  ;;  %v540_v20 = vor.u32 %v631_v18, %v537_v19  ;;  %v626_v23 = vld [vmem:[#allocation2 + $0x24] sm:$0xf]  ;;  %v512_v24 = vor.u32 %v628_v22, %v511_v21  ;;  %v513_v25 = vld [vmem:[#allocation2 + $0x30] sm:$0xf0]  ;;  %v519_v26 = vld [vmem:[#allocation2 + $0x28] sm:$0xf] }
  0x1b   :  { %492 = vmatmul.msk.bf16.gmra.mxu1 %vm62_vm0, %v49_v60  ;;  %v629_v27 = vld [vmem:[#allocation2 + $0x34] sm:$0xf0]  ;;  %v516_v28 = vor.u32 %v626_v23, %v513_v25  ;;  %v627_v30 = vld [vmem:[#allocation2 + $0x2c] sm:$0xf]  ;;  %v521_v31 = vld [vmem:[#allocation2 + $0x38] sm:$0xf0] }
  0x1c   :  { %322 = vmatpush.bf16.msrb.mxu1 %v544_v0  ;;  %351 = vmatpush.bf16.msra.mxu2 %v548_v4  ;;  %v520_v29 = vor.u32 %v629_v27, %v519_v26  ;;  %v524_v32 = vor.u32 %v627_v30, %v521_v31  ;;  %v495_v33 = vld [vmem:[#allocation2] sm:$0xf]  ;;  %v624_v34 = vld [vmem:[#allocation2 + $0xc] sm:$0xf0]  ;;  %v622_v35 = vld [vmem:[#allocation2 + $0x4] sm:$0xf] }
  0x1d   :  { %380 = vmatpush.bf16.msra.mxu3 %v552_v5  ;;  %409 = vmatpush.bf16.msrb.mxu0 %v556_v8  ;;  %v496_v36 = vor.u32 %v624_v34, %v495_v33  ;;  %v497_v37 = vld [vmem:[#allocation2 + $0x10] sm:$0xf0]  ;;  %v503_v38 = vld [vmem:[#allocation2 + $0x8] sm:$0xf]  ;;  %v625_v39 = vld [vmem:[#allocation2 + $0x14] sm:$0xf0] }
  0x1e   :  { %v500_v40 = vor.u32 %v622_v35, %v497_v37  ;;  %v504_v41 = vor.u32 %v625_v39, %v503_v38  ;;  %v623_v42 = vld [vmem:[#allocation2 + $0xc] sm:$0xf]  ;;  %v505_v43 = vld [vmem:[#allocation2 + $0x18] sm:$0xf0]  ;;  %v659_v46 = vld [vmem:[%s837_s2] ss:$0 sm:$0xff] }
  0x1f   :  { %v508_v44 = vor.u32 %v623_v42, %v505_v43  ;;  %v148_v10 = vld [vmem:[%s839_s4] sm:$0xf]  ;;  %s715_s4 = smov [#allocation5]  }
  0x20   :  { %323 = vmatpush.bf16.msrb.mxu1 %v528_v12  ;;  %352 = vmatpush.bf16.msra.mxu2 %v532_v16  ;;  %v789_v13 = vperm.slane %v148_v10, 0  ;;  %v791_v14 = vperm.slane %v148_v10, 1  ;;  %v793_v15 = vperm.slane %v148_v10, 3  ;;  %v795_v16 = vperm.slane %v148_v10, 2  ;;  %s470_s18 = sshll.u32 %s715_s4, 4  ;;  %s471_s18 = int_to_ptr.vmem [resolvable:$true] %s470_s18 }
  0x21   :  { %381 = vmatpush.bf16.msra.mxu3 %v536_v17  ;;  %410 = vmatpush.bf16.msrb.mxu0 %v540_v20 }
  0x24   :  { %324 = vmatpush.bf16.msrb.mxu1 %v512_v24  ;;  %353 = vmatpush.bf16.msra.mxu2 %v516_v28 }
  0x25   :  { %382 = vmatpush.bf16.msra.mxu3 %v520_v29  ;;  %411 = vmatpush.bf16.msrb.mxu0 %v524_v32 }
  0x28   :  { %325 = vmatpush.bf16.msrb.mxu1 %v496_v36  ;;  %354 = vmatpush.bf16.msra.mxu2 %v500_v40 }
  0x29   :  { %383 = vmatpush.bf16.msra.mxu3 %v504_v41  ;;  %412 = vmatpush.bf16.msrb.mxu0 %v508_v44 }
  0x87   :  { %v84_v45 = vpop.f32.mrf.mxu0 }
  0x88   :  { %v85_v47 = vadd.f32 %v659_v46, %v84_v45  ;;  %v94_v54 = vpop.f32.mrf.mxu1 }
  0x89   :  { %v95_v62 = vadd.f32 %v659_v46, %v94_v54 }
  0x8a   :  { %v104_v50 = vmax.f32 %v85_v47, 0.0 }
  0x8b   :  { %v108_v1 = vmax.f32 %v95_v62, 0.0 }
  0x8f   :  { %v86_v48 = vpop.f32.mrf.mxu0 }
  0x90   :  { %v87_v49 = vadd.f32 %v659_v46, %v86_v48  ;;  %v96_v61 = vpop.f32.mrf.mxu1 }
  0x91   :  { %v97_v63 = vadd.f32 %v659_v46, %v96_v61 }
  0x92   :  { %v105_v51 = vmax.f32 %v87_v49, 0.0 }
  0x93   :  { %v109_v2 = vmax.f32 %v97_v63, 0.0 }
  0x94   :  { %v112_v52 = vpack.c.bf16 %v105_v51, %v104_v50 }
  0x95   :  { %v114_v3 = vpack.c.bf16 %v109_v2, %v108_v1 }
  0x96   :  { %326 = vmatmul.bf16.vlgmr.msrb.gmra.mxu1 %v112_v52  ;;  %355 = vmatmul.bf16.vlgmr.msra.gmra.mxu2 %v112_v52 }
  0x97   :  { %384 = vmatmul.bf16.vlgmr.msra.gmra.mxu3 %v112_v52  ;;  %413 = vmatmul.bf16.vlgmr.msrb.gmra.mxu0 %v112_v52  ;;  %v89_v53 = vpop.f32.mrf.mxu0 }
  0x98   :  { %v90_v55 = vadd.f32 %v659_v46, %v89_v53  ;;  %v99_v0 = vpop.f32.mrf.mxu1 }
  0x99   :  { %v100_v5 = vadd.f32 %v659_v46, %v99_v0 }
  0x9a   :  { %v106_v58 = vmax.f32 %v90_v55, 0.0 }
  0x9b   :  { %v110_v7 = vmax.f32 %v100_v5, 0.0 }
  0x9f   :  { %v91_v56 = vpop.f32.mrf.mxu0 }
  0xa0   :  { %v92_v57 = vadd.f32 %v659_v46, %v91_v56  ;;  %v101_v4 = vpop.f32.mrf.mxu1 }
  0xa1   :  { %v102_v6 = vadd.f32 %v659_v46, %v101_v4 }
  0xa2   :  { %v107_v59 = vmax.f32 %v92_v57, 0.0 }
  0xa3   :  { %v111_v8 = vmax.f32 %v102_v6, 0.0 }
  0xa4   :  { %v113_v60 = vpack.c.bf16 %v107_v59, %v106_v58 }
  0xa5   :  { %v115_v9 = vpack.c.bf16 %v111_v8, %v110_v7 }
  0xa6   :  { %331 = vmatmul.bf16.gmra.mxu1 %v113_v60  ;;  %360 = vmatmul.bf16.gmra.mxu2 %v113_v60 }
  0xa7   :  { %389 = vmatmul.bf16.gmra.mxu3 %v113_v60  ;;  %418 = vmatmul.bf16.gmra.mxu0 %v113_v60 }
  0xb6   :  { %336 = vmatmul.bf16.gmra.mxu1 %v114_v3  ;;  %365 = vmatmul.bf16.gmra.mxu2 %v114_v3 }
  0xb7   :  { %394 = vmatmul.bf16.gmra.mxu3 %v114_v3  ;;  %423 = vmatmul.bf16.gmra.mxu0 %v114_v3 }
  0xc6   :  { %341 = vmatmul.bf16.gmra.mxu1 %v115_v9  ;;  %370 = vmatmul.bf16.gmra.mxu2 %v115_v9 }
  0xc7   :  { %399 = vmatmul.bf16.gmra.mxu3 %v115_v9  ;;  %428 = vmatmul.bf16.gmra.mxu0 %v115_v9 }
 0x113   :  { %v327_v11 = vpop.f32.mrf.mxu1 }
 0x114   :  { %v414_v12 = vpop.f32.mrf.mxu0  ;;  %v328_v18 = vadd.f32 %v327_v11, %v789_v13 }
 0x115   :  { %v415_v21 = vadd.f32 %v414_v12, %v793_v15 }
 0x119   :  { %v356_v17 = vpop.f32.mrf.mxu2 }
 0x11a   :  { %v357_v19 = vadd.f32 %v356_v17, %v791_v14  ;;  %v385_v20 = vpop.f32.mrf.mxu3 }
 0x11b   :  { %v386_v22 = vadd.f32 %v385_v20, %v795_v16  ;;  %v329_v23 = vpop.f32.mrf.mxu1 }
 0x11c   :  { %v434_v24 = vpack.c.bf16 %v357_v19, %v328_v18  ;;  %v416_v25 = vpop.f32.mrf.mxu0  ;;  %v330_v28 = vadd.f32 %v329_v23, %v789_v13 }
 0x11d   :  { %v435_v26 = vpack.c.bf16 %v415_v21, %v386_v22  ;;  %v417_v31 = vadd.f32 %v416_v25, %v793_v15 }
 0x11e   :  { %450 = vst [vmem:[#allocation5] sm:$0xff] %v434_v24 }
 0x11f   :  { %451 = vst [vmem:[#allocation5 + $0x8] sm:$0xff] %v435_v26 }
 0x121   :  { %v358_v27 = vpop.f32.mrf.mxu2 }
 0x122   :  { %v359_v29 = vadd.f32 %v358_v27, %v791_v14  ;;  %v387_v30 = vpop.f32.mrf.mxu3 }
 0x123   :  { %v388_v32 = vadd.f32 %v387_v30, %v795_v16  ;;  %v332_v33 = vpop.f32.mrf.mxu1 }
 0x124   :  { %v436_v34 = vpack.c.bf16 %v359_v29, %v330_v28  ;;  %v419_v35 = vpop.f32.mrf.mxu0  ;;  %v333_v38 = vadd.f32 %v332_v33, %v789_v13 }
 0x125   :  { %v437_v36 = vpack.c.bf16 %v417_v31, %v388_v32  ;;  %v420_v41 = vadd.f32 %v419_v35, %v793_v15 }
 0x126   :  { %452 = vst [vmem:[#allocation5 + $0x10] sm:$0xff] %v436_v34 }
 0x127   :  { %453 = vst [vmem:[#allocation5 + $0x18] sm:$0xff] %v437_v36 }
 0x129   :  { %v361_v37 = vpop.f32.mrf.mxu2 }
 0x12a   :  { %v362_v39 = vadd.f32 %v361_v37, %v791_v14  ;;  %v390_v40 = vpop.f32.mrf.mxu3 }
 0x12b   :  { %v391_v42 = vadd.f32 %v390_v40, %v795_v16  ;;  %v334_v43 = vpop.f32.mrf.mxu1 }
 0x12c   :  { %v438_v44 = vpack.c.bf16 %v362_v39, %v333_v38  ;;  %v421_v45 = vpop.f32.mrf.mxu0  ;;  %v335_v48 = vadd.f32 %v334_v43, %v789_v13 }
 0x12d   :  { %v439_v46 = vpack.c.bf16 %v420_v41, %v391_v42  ;;  %v422_v51 = vadd.f32 %v421_v45, %v793_v15 }
 0x12e   :  { %454 = vst [vmem:[#allocation5 + $0x20] sm:$0xff] %v438_v44 }
 0x12f   :  { %455 = vst [vmem:[#allocation5 + $0x28] sm:$0xff] %v439_v46 }
 0x131   :  { %v363_v47 = vpop.f32.mrf.mxu2 }
 0x132   :  { %v364_v49 = vadd.f32 %v363_v47, %v791_v14  ;;  %v392_v50 = vpop.f32.mrf.mxu3 }
 0x133   :  { %v393_v52 = vadd.f32 %v392_v50, %v795_v16  ;;  %v337_v53 = vpop.f32.mrf.mxu1 }
 0x134   :  { %v440_v54 = vpack.c.bf16 %v364_v49, %v335_v48  ;;  %v424_v55 = vpop.f32.mrf.mxu0  ;;  %v338_v58 = vadd.f32 %v337_v53, %v789_v13 }
 0x135   :  { %v441_v56 = vpack.c.bf16 %v422_v51, %v393_v52  ;;  %v425_v61 = vadd.f32 %v424_v55, %v793_v15 }
 0x136   :  { %456 = vst [vmem:[#allocation5 + $0x30] sm:$0xff] %v440_v54 }
 0x137   :  { %457 = vst [vmem:[#allocation5 + $0x38] sm:$0xff] %v441_v56 }
 0x139   :  { %v366_v57 = vpop.f32.mrf.mxu2 }
 0x13a   :  { %v367_v59 = vadd.f32 %v366_v57, %v791_v14  ;;  %v395_v60 = vpop.f32.mrf.mxu3 }
 0x13b   :  { %v396_v62 = vadd.f32 %v395_v60, %v795_v16  ;;  %v339_v63 = vpop.f32.mrf.mxu1 }
 0x13c   :  { %v442_v0 = vpack.c.bf16 %v367_v59, %v338_v58  ;;  %v426_v1 = vpop.f32.mrf.mxu0  ;;  %v340_v4 = vadd.f32 %v339_v63, %v789_v13 }
 0x13d   :  { %v443_v2 = vpack.c.bf16 %v425_v61, %v396_v62  ;;  %v427_v7 = vadd.f32 %v426_v1, %v793_v15 }
 0x13e   :  { %458 = vst [vmem:[#allocation5 + $0x40] sm:$0xff] %v442_v0 }
 0x13f   :  { %459 = vst [vmem:[#allocation5 + $0x48] sm:$0xff] %v443_v2 }
 0x141   :  { %v368_v3 = vpop.f32.mrf.mxu2 }
 0x142   :  { %v369_v5 = vadd.f32 %v368_v3, %v791_v14  ;;  %v397_v6 = vpop.f32.mrf.mxu3 }
 0x143   :  { %v398_v8 = vadd.f32 %v397_v6, %v795_v16  ;;  %v342_v11 = vpop.f32.mrf.mxu1 }
 0x144   :  { %v444_v9 = vpack.c.bf16 %v369_v5, %v340_v4  ;;  %v429_v12 = vpop.f32.mrf.mxu0  ;;  %v343_v18 = vadd.f32 %v342_v11, %v789_v13 }
 0x145   :  { %v445_v10 = vpack.c.bf16 %v427_v7, %v398_v8  ;;  %v430_v21 = vadd.f32 %v429_v12, %v793_v15 }
 0x146   :  { %460 = vst [vmem:[#allocation5 + $0x50] sm:$0xff] %v444_v9 }
 0x147   :  { %461 = vst [vmem:[#allocation5 + $0x58] sm:$0xff] %v445_v10 }
 0x149   :  { %v371_v17 = vpop.f32.mrf.mxu2 }
 0x14a   :  { %v372_v19 = vadd.f32 %v371_v17, %v791_v14  ;;  %v400_v20 = vpop.f32.mrf.mxu3 }
 0x14b   :  { %v401_v22 = vadd.f32 %v400_v20, %v795_v16  ;;  %v344_v25 = vpop.f32.mrf.mxu1 }
 0x14c   :  { %v446_v23 = vpack.c.bf16 %v372_v19, %v343_v18  ;;  %v431_v26 = vpop.f32.mrf.mxu0  ;;  %v345_v28 = vadd.f32 %v344_v25, %v789_v13 }
 0x14d   :  { %v447_v24 = vpack.c.bf16 %v430_v21, %v401_v22  ;;  %v432_v31 = vadd.f32 %v431_v26, %v793_v15 }
 0x14e   :  { %462 = vst [vmem:[#allocation5 + $0x60] sm:$0xff] %v446_v23 }
 0x14f   :  { %463 = vst [vmem:[#allocation5 + $0x68] sm:$0xff] %v447_v24 }
 0x151   :  { %v373_v27 = vpop.f32.mrf.mxu2 }
 0x152   :  { %v374_v29 = vadd.f32 %v373_v27, %v791_v14  ;;  %v402_v30 = vpop.f32.mrf.mxu3 }
 0x153   :  { %v403_v32 = vadd.f32 %v402_v30, %v795_v16 }
 0x154   :  { %v448_v33 = vpack.c.bf16 %v374_v29, %v345_v28 }
 0x155   :  { %v449_v34 = vpack.c.bf16 %v432_v31, %v403_v32 }
 0x156   :  { %464 = vst [vmem:[#allocation5 + $0x70] sm:$0xff] %v448_v33 }
 0x157   :  { %465 = vst [vmem:[#allocation5 + $0x78] sm:$0xff] %v449_v34 }
 0x158   :  { %478 = dma.vmem_to_hbm [thread:$0]  %s471_s18, 2048, %s473_s21, [#allocation4], %s713_s23, %s713_s23, %s714_s24  }
 0x159   :  { %710 = dma.done.wait [#allocation4], 2048  }
 0x15a   :  { %711 = vsyncadd [#allocation4], 4294965248 }
 0x15b   :  { %483 = vsyncpa [#allocation3], 1 }
 0x15c   :  { %484 = vsyncpa [#allocation4], 1 }

</bundles_post_ra>
